<compile_context>
chip_gen: v6e
topology: v6e:2x2x1
jax: 0.10.0
libtpu: 0.0.40
codegen_flags: <defaults>
</compile_context>

<pallas_src>
import jax
import jax.numpy as jnp
from jax.experimental import pallas as pl
from jax.experimental.pallas import tpu as pltpu


class Layer:
    """JAX/Pallas mirror of the abstract PGM Layer."""

    def __init__(self, name: str = "layer0"):
        self.name = name
        self.full_name = f"Abstract_{name}"
        self.shape = None

    def forward(self, *args, materialize: bool = True, donate: bool = False):
        # Abstract forward: no compute.  If an array is given, either pass it
        # straight through (zero HBM traffic — the faithful no-op), or push it
        # through the optimized Pallas identity-copy kernel when an explicit
        # materialized copy is requested.
        if not args:
            return None
        x = args[0]
        if not materialize:
            return x
        return _identity_pallas(x, donate=donate)

    def gamma(self, *args):
        # TODO(synk): gamma() is abstract/undefined in the reference; nothing to port.
        return None


# ----------------------------------------------------------------------------
# Optimized identity (materialized copy) kernel.
# ----------------------------------------------------------------------------

_FALLBACK_LANES = 512              # lane-dense last dim when padding is needed
_TARGET_BLOCK_BYTES = 2 << 20      # ~2 MiB per tile; 4x live (2 in + 2 out bufs)
_MIN_PALLAS_BYTES = 1 << 20        # below this, pallas_call launch overhead dominates
_VMEM_LIMIT_BYTES = 16 << 20       # explicit scoped-VMEM budget, safe on v5e/v6e/v7x


def _copy_kernel(x_ref, o_ref):
    # Whole-tile copy: load the VMEM tile and store it unchanged (unmasked,
    # lane-dense stores since the last dim is a multiple of 128).
    o_ref[...] = x_ref[...]


def _identity_pallas(x: jax.Array, *, donate: bool = False,
                     force_pallas: bool = False) -> jax.Array:
    if x.size == 0:
        return x

    dtype = x.dtype
    itemsize = jnp.dtype(dtype).itemsize
    n = x.size

    # Small-input fast path: a plain device copy beats the fixed pallas_call
    # launch + pipeline prologue/epilogue for tiny tensors.
    if (n * itemsize) < _MIN_PALLAS_BYTES and not force_pallas:
        return jnp.copy(x)

    orig_shape = x.shape

    # Pick a lane-dense last dim (multiple of 128) that divides n exactly so no
    # wrapper-side pad/slice round trip (extra full-array HBM passes) is needed.
    lanes = None
    for cand in (512, 256, 128):
        if n % cand == 0:
            lanes = cand
            break
    padded = lanes is None
    if padded:
        lanes = _FALLBACK_LANES

    rows = pl.cdiv(n, lanes)
    flat = x.reshape(-1)
    if padded:
        flat = jnp.pad(flat, (0, rows * lanes - n))
    x2d = flat.reshape(rows, lanes)

    # Sublane packing multiple: 8 for 32-bit, 16 for bf16/fp16, 32 for int8/fp8.
    sublane = max(8, 32 // max(itemsize, 1))

    # Rows per tile targeting ~2 MiB blocks, a multiple of the sublane packing.
    target_rows = max(sublane, _TARGET_BLOCK_BYTES // (lanes * itemsize))
    target_rows = (target_rows // sublane) * sublane
    rows_per_block = min(target_rows, rows)

    # Ragged last block is masked by Pallas automatically — no row padding.
    grid = (pl.cdiv(rows, rows_per_block),)

    block_bytes = rows_per_block * lanes * itemsize
    vmem_limit = max(_VMEM_LIMIT_BYTES, 4 * block_bytes + (2 << 20))

    extra_kwargs = {}
    if donate and not padded:
        # Opt-in donation: output aliases the input buffer, eliminating the
        # 2N-byte HBM roofline cost.  Result is not an independent buffer.
        extra_kwargs["input_output_aliases"] = {0: 0}

    out2d = pl.pallas_call(
        _copy_kernel,
        out_shape=jax.ShapeDtypeStruct((rows, lanes), dtype),
        grid=grid,
        in_specs=[pl.BlockSpec((rows_per_block, lanes), lambda i: (i, 0))],
        out_specs=pl.BlockSpec((rows_per_block, lanes), lambda i: (i, 0)),
        compiler_params=pltpu.CompilerParams(
            dimension_semantics=("parallel",),  # shard copy across TCs on v7x
            vmem_limit_bytes=vmem_limit,
        ),
        **extra_kwargs,
    )(x2d)

    out = out2d.reshape(-1)
    if padded:
        out = out[:n]
    return out.reshape(orig_shape)


if __name__ == "__main__":
    key = jax.random.PRNGKey(0)
    # Small NCHW input consistent with a PGM layer operating on image-like data.
    x = jax.random.normal(key, (2, 4, 16, 16), dtype=jnp.float32)

    layer = Layer(name="layer0")

    # Exercise the Pallas streaming-copy kernel (demo input is below the
    # small-input threshold, so force the kernel path explicitly).
    y = _identity_pallas(x, force_pallas=True)
    y = jax.block_until_ready(y)
    assert y.shape == x.shape and y.dtype == x.dtype
    assert bool(jnp.allclose(y, x))

    # Layer.forward materialized path (fast path for this tiny input).
    y2 = jax.block_until_ready(layer.forward(x))
    assert y2.shape == x.shape and bool(jnp.allclose(y2, x))

    # Faithful abstract no-op path (zero HBM traffic).
    z = layer.forward(x, materialize=False)
    assert z is x

    print("KERNEL_OK")
</pallas_src>

<mosaic_0001>
module attributes {stable_mosaic.version = 11 : i64} {
  func.func @_copy_kernel(%arg0: i32, %arg1: memref<4x512xf32, #tpu.memory_space<vmem>>, %arg2: memref<4x512xf32, #tpu.memory_space<vmem>>) attributes {dimension_semantics = [#tpu.dimension_semantics<parallel>], iteration_bounds = array<i64: 1>, scalar_prefetch = 0 : i64, scratch_operands = 0 : i64, tpu.core_type = #tpu.core_type<tc>, window_params = [{transform_indices = @transform_0, window_bounds = array<i64: 4, 512>}, {transform_indices = @transform_1, window_bounds = array<i64: 4, 512>}]} {
    %c0 = arith.constant 0 : index
    %c0_0 = arith.constant 0 : index
    %0 = vector.load %arg1[%c0, %c0_0] : memref<4x512xf32, #tpu.memory_space<vmem>>, vector<4x512xf32>
    %c0_1 = arith.constant 0 : index
    %c0_2 = arith.constant 0 : index
    %1 = vector.load %arg2[%c0_1, %c0_2] : memref<4x512xf32, #tpu.memory_space<vmem>>, vector<4x512xf32>
    tpu.vector_store %arg2[%c0_1, %c0_2], %0 {strides = array<i32>} : memref<4x512xf32, #tpu.memory_space<vmem>>, vector<4x512xf32>,
    return
  }
  func.func @transform_0(%arg0: i32) -> (i32, i32) {
    %c0_i32 = arith.constant 0 : i32
    %c0_i32_0 = arith.constant 0 : i32
    return %arg0, %c0_i32 : i32, i32
  }
  func.func @transform_1(%arg0: i32) -> (i32, i32) {
    %c0_i32 = arith.constant 0 : i32
    %c0_i32_0 = arith.constant 0 : i32
    return %arg0, %c0_i32 : i32, i32
  }
}

</mosaic_0001>

<bundles_post_ra>
// kernel: tpu_custom_call.1
= control target key start
LH: loop header
LB: loop body
LE: loop exit
PB: predicated region body
PF: predicated region fallthrough
CT: control target
= control target key end

     0   :  { %6 = vsyncpa [#allocation3], 0  ;;  %s104_s0 = inlined_call_operand.hbm [shape: f32[4,512], index: 0, kind: input, shape index: {}]   ;;  %s105_s1 = inlined_call_operand.hbm [shape: f32[4,512], index: 1, kind: output, shape index: {}]  }
   0x1   :  { %7 = vsyncpa [#allocation4], 0  ;;  %s86_s6 = smov [#allocation2]  }
   0x2   :  { %s14_s7 = sshll.u32 %s86_s6, 4  ;;  %s15_s7 = int_to_ptr.vmem [resolvable:$true] %s14_s7 }
   0x3   :  { %s50_s8 = scalar_lea.vmem %s15_s7, 256  ;;  %p55_p1 = scmp.lt.s32.totalorder %s15_s7, %s15_s7 }
   0x4   :  { %p51_p0 = scmp.ne.s32.totalorder %s15_s7, %s50_s8  ;;  %p56_p2 = scmp.lt.s32.totalorder %s50_s8, %s50_s8 }
   0x6   :  { %p57_p3 = por %p56_p2, %p55_p1 }
   0x8   :  { %p58_p4 = pnand %p57_p3, %p51_p0 }
   0xa   :  { %61 = shalt.err (!%p58_p4)
}
   0xb   :  { %17 = dma.hbm_to_vmem [thread:$0]  %s104_s0, 256, %s15_s7, [#allocation3]  }
   0xc   :  { %82 = dma.done.wait [#allocation3], 256  }
   0xd   :  { %83 = vsyncadd [#allocation3], 4294967040  ;;  %s87_s11 = smov [#allocation5]   ;;  %v21_v0 = vld [vmem:[#allocation2] sm:$0xff]  ;;  %v22_v1 = vld [vmem:[#allocation2 + $0x8] sm:$0xff] }
   0xe   :  { %s31_s12 = sshll.u32 %s87_s11, 4  ;;  %23 = vst [vmem:[#allocation5] sm:$0xff] %v21_v0  ;;  %24 = vst [vmem:[#allocation5 + $0x8] sm:$0xff] %v22_v1  ;;  %s32_s12 = int_to_ptr.vmem [resolvable:$true] %s31_s12 }
   0xf   :  { %s62_s13 = scalar_lea.vmem %s32_s12, 256  ;;  %p67_p6 = scmp.lt.s32.totalorder %s32_s12, %s32_s12 }
  0x10   :  { %p63_p5 = scmp.ne.s32.totalorder %s32_s12, %s62_s13  ;;  %p68_p7 = scmp.lt.s32.totalorder %s62_s13, %s62_s13 }
  0x12   :  { %p69_p8 = por %p68_p7, %p67_p6 }
  0x14   :  { %p70_p9 = pnand %p69_p8, %p63_p5 }
  0x16   :  { %73 = shalt.err (!%p70_p9)
}
  0x17   :  { %34 = dma.vmem_to_hbm [thread:$0]  %s32_s12, 256, %s105_s1, [#allocation4]  }
  0x18   :  { %84 = dma.done.wait [#allocation4], 256  }
  0x19   :  { %85 = vsyncadd [#allocation4], 4294967040 }
  0x1a   :  { %38 = vsyncpa [#allocation3], 1 }
  0x1b   :  { %39 = vsyncpa [#allocation4], 1 }

</bundles_post_ra>
